<compile_context>
chip_gen: v7x
topology: tpu7x:2x2x1
jax: 0.10.0
libtpu: 0.0.40
codegen_flags: <defaults>
</compile_context>

<pallas_src>
import jax
import jax.numpy as jnp
import numpy as np
from jax.experimental import pallas as pl
from jax.experimental.pallas import tpu as pltpu


_LANE = 128                          # lane width: full, unmasked 128-lane stores
_VMEM_BUDGET = 24 * 1024 * 1024      # budget for double-buffered in+out blocks
_VMEM_LIMIT = 34 * 1024 * 1024       # scoped-VMEM limit handed to Mosaic
_TARGET_STEPS = 8                    # aim for ~8 grid steps on large inputs
_MIN_SPLIT_BYTES = 512 * 1024        # never split below ~512 KiB per step


def _cast_kernel(x_ref, o_ref):
    # Pure elementwise convert on the VPU; Pallas pipelines the surrounding
    # HBM<->VMEM DMAs across grid steps.
    o_ref[...] = x_ref[...].astype(o_ref.dtype)


def _round_up(x, m):
    return ((x + m - 1) // m) * m


def _sublane_align(dt):
    # Native second-minor packing: 8 rows for 32-bit, 16 for 16-bit, 32 for 8-bit.
    return max(8, 32 // max(1, jnp.dtype(dt).itemsize))


def _choose_tile_m(rows, in_itemsize, out_itemsize, align):
    """Pick the sublane-row block size for a (rows, 128) slab."""
    # Double-buffered (input block + output block) must fit the VMEM budget.
    row_bytes = 2 * _LANE * (in_itemsize + out_itemsize)
    cap = max(align, (_VMEM_BUDGET // row_bytes) // align * align)

    # Never bigger than the (aligned) array itself.
    tile_m = min(cap, _round_up(rows, align))

    # If the array is large enough, cap the tile so the grid has several
    # steps (DMA pipelining + megacore), but keep each step >= ~512 KiB.
    min_split_rows = _round_up(
        max(align, _MIN_SPLIT_BYTES // (_LANE * in_itemsize)), align)
    if rows >= 2 * min_split_rows:
        target = _round_up(pl.cdiv(rows, _TARGET_STEPS), align)
        tile_m = min(tile_m, max(target, min_split_rows))
    return tile_m


def _cast_2d(x2, dtype):
    """Cast a lane-dense (rows, 128) slab to `dtype` with a 1-D pipelined grid."""
    rows = x2.shape[0]
    in_itemsize = jnp.dtype(x2.dtype).itemsize
    out_itemsize = jnp.dtype(dtype).itemsize
    align = max(_sublane_align(x2.dtype), _sublane_align(dtype))

    tile_m = _choose_tile_m(rows, in_itemsize, out_itemsize, align)
    grid = (pl.cdiv(rows, tile_m),)   # partial trailing block is masked by Pallas

    bytes_accessed = rows * _LANE * (in_itemsize + out_itemsize)

    return pl.pallas_call(
        _cast_kernel,
        out_shape=jax.ShapeDtypeStruct((rows, _LANE), dtype),
        grid=grid,
        in_specs=[pl.BlockSpec((tile_m, _LANE), lambda i: (i, 0))],
        out_specs=pl.BlockSpec((tile_m, _LANE), lambda i: (i, 0)),
        compiler_params=pltpu.CompilerParams(
            dimension_semantics=("parallel",),
            vmem_limit_bytes=_VMEM_LIMIT),
        cost_estimate=pl.CostEstimate(
            flops=0, transcendentals=0, bytes_accessed=bytes_accessed),
    )(x2)


def cast(x, dtype):
    """Pallas implementation of Cast.forward: return x cast to `dtype`."""
    x = jnp.asarray(x)
    dtype = jnp.dtype(dtype)

    # Identity fast path: no-op casts skip the kernel (and the HBM round trip).
    if x.dtype == dtype:
        return x

    orig_shape = x.shape
    total = x.size
    if total == 0:
        return jnp.zeros(orig_shape, dtype=dtype)

    if total % _LANE == 0:
        # Common case: no padding, no slicing — just a free reshape to a
        # lane-dense slab and back.
        rows = total // _LANE
        out2 = _cast_2d(x.reshape(rows, _LANE), dtype)
        return out2.reshape(orig_shape)

    # Ragged tail: pad the flat array up to the next 128-element boundary.
    rows = pl.cdiv(total, _LANE)
    flat = jnp.pad(x.reshape(-1), (0, rows * _LANE - total))
    out2 = _cast_2d(flat.reshape(rows, _LANE), dtype)
    return out2.reshape(-1)[:total].reshape(orig_shape)


if __name__ == "__main__":
    key = jax.random.PRNGKey(0)
    k1, k2, k3 = jax.random.split(key, 3)

    # Shapes consistent with the module's typical use: (B, C, H, W).
    B, C, H, W = 2, 4, 16, 16
    x = jax.random.normal(k1, (B, C, H, W), dtype=jnp.float32) * 10.0

    # --- Case 1: float32 -> bfloat16 (lane-dense fast path, single block)
    out_bf16 = jax.block_until_ready(cast(x, jnp.bfloat16))
    ref_bf16 = x.astype(jnp.bfloat16)
    np.testing.assert_array_equal(
        np.asarray(out_bf16, dtype=np.float32),
        np.asarray(ref_bf16, dtype=np.float32))
    assert out_bf16.dtype == jnp.bfloat16

    # --- Case 2: float32 -> int32
    out_i32 = jax.block_until_ready(cast(x, jnp.int32))
    ref_i32 = x.astype(jnp.int32)
    np.testing.assert_array_equal(np.asarray(out_i32), np.asarray(ref_i32))
    assert out_i32.dtype == jnp.int32

    # --- Case 3: ragged shape (exercises the padding path), bf16 -> float32
    y = jax.random.normal(k2, (3, 5, 7), dtype=jnp.float32).astype(jnp.bfloat16)
    out_f32 = jax.block_until_ready(cast(y, jnp.float32))
    ref_f32 = y.astype(jnp.float32)
    np.testing.assert_array_equal(np.asarray(out_f32), np.asarray(ref_f32))
    assert out_f32.dtype == jnp.float32 and out_f32.shape == (3, 5, 7)

    # --- Case 4: multi-step grid with a partial trailing block, f32 -> bf16
    z = jax.random.normal(k3, (257, 1024), dtype=jnp.float32)  # 2056 rows of 128
    out_z = jax.block_until_ready(cast(z, jnp.bfloat16))
    ref_z = z.astype(jnp.bfloat16)
    np.testing.assert_array_equal(
        np.asarray(out_z, dtype=np.float32),
        np.asarray(ref_z, dtype=np.float32))
    assert out_z.dtype == jnp.bfloat16 and out_z.shape == (257, 1024)

    # --- Case 5: identity fast path (no kernel launch)
    out_id = jax.block_until_ready(cast(x, jnp.float32))
    np.testing.assert_array_equal(np.asarray(out_id), np.asarray(x))
    assert out_id.dtype == jnp.float32

    print("KERNEL_OK")
</pallas_src>

<mosaic_0001>
module attributes {stable_mosaic.version = 11 : i64} {
  func.func @_cast_kernel(%arg0: i32, %arg1: memref<16x128xf32, #tpu.memory_space<vmem>>, %arg2: memref<16x128xbf16, #tpu.memory_space<vmem>>) attributes {dimension_semantics = [#tpu.dimension_semantics<parallel>], iteration_bounds = array<i64: 1>, scalar_prefetch = 0 : i64, scratch_operands = 0 : i64, tpu.core_type = #tpu.core_type<tc>, window_params = [{transform_indices = @transform_0, window_bounds = array<i64: 16, 128>}, {transform_indices = @transform_1, window_bounds = array<i64: 16, 128>}]} {
    %c0 = arith.constant 0 : index
    %c0_0 = arith.constant 0 : index
    %0 = vector.load %arg1[%c0, %c0_0] : memref<16x128xf32, #tpu.memory_space<vmem>>, vector<16x128xf32>
    %1 = arith.truncf %0 : vector<16x128xf32> to vector<16x128xbf16>
    %c0_1 = arith.constant 0 : index
    %c0_2 = arith.constant 0 : index
    %2 = vector.load %arg2[%c0_1, %c0_2] : memref<16x128xbf16, #tpu.memory_space<vmem>>, vector<16x128xbf16>
    tpu.vector_store %arg2[%c0_1, %c0_2], %1 {strides = array<i32>} : memref<16x128xbf16, #tpu.memory_space<vmem>>, vector<16x128xbf16>,
    return
  }
  func.func @transform_0(%arg0: i32) -> (i32, i32) {
    %c0_i32 = arith.constant 0 : i32
    %c0_i32_0 = arith.constant 0 : i32
    return %arg0, %c0_i32 : i32, i32
  }
  func.func @transform_1(%arg0: i32) -> (i32, i32) {
    %c0_i32 = arith.constant 0 : i32
    %c0_i32_0 = arith.constant 0 : i32
    return %arg0, %c0_i32 : i32, i32
  }
}

</mosaic_0001>

<bundles_post_ra>
// kernel: tpu_custom_call.1
= control target key start
LH: loop header
LB: loop body
LE: loop exit
PB: predicated region body
PF: predicated region fallthrough
CT: control target
= control target key end

     0   :  { %6 = vsyncpa [#allocation3], 0  ;;  %s155_s0 = inlined_call_operand.hbm [shape: f32[16,128], index: 0, kind: input, shape index: {}]   ;;  %s156_s1 = inlined_call_operand.hbm [shape: bf16[16,128], index: 1, kind: output, shape index: {}]  }
   0x1   :  { %7 = vsyncpa [#allocation4], 0  ;;  %s115_s6 = smov [#allocation2]   ;;  %s67_s10 = scalar_lea.hbm %s155_s0, 256 }
   0x2   :  { %s13_s7 = sshll.u32 %s115_s6, 4  ;;  %p68_p0 = scmp.ne.s32.totalorder %s155_s0, %s67_s10  ;;  %s14_s7 = int_to_ptr.vmem [resolvable:$true] %s13_s7 }
   0x3   :  { %p71_p1 = scmp.lt.u32.totalorder %s67_s10, %s155_s0 }
   0x5   :  { %p73_p2 = pnand %p71_p1, %p68_p0 }
   0x7   :  { %76 = shalt.err (!%p73_p2)
}
   0x8   :  { %s77_s15 = scalar_lea.vmem %s14_s7, 256  ;;  %p82_p4 = scmp.lt.s32.totalorder %s14_s7, %s14_s7 }
   0x9   :  { %p78_p3 = scmp.ne.s32.totalorder %s14_s7, %s77_s15  ;;  %p83_p5 = scmp.lt.s32.totalorder %s77_s15, %s77_s15 }
   0xb   :  { %p84_p6 = por %p83_p5, %p82_p4 }
   0xd   :  { %p85_p7 = pnand %p84_p6, %p78_p3 }
   0xf   :  { %88 = shalt.err (!%p85_p7)
}
  0x10   :  { %s116_s16 = smov 128   ;;  %s117_s17 = smov 8  }
  0x11   :  { %19 = dma.hbm_to_vmem [thread:$0]  %s155_s0, 256, %s14_s7, [#allocation3], %s116_s16, %s116_s16, %s117_s17  }
  0x12   :  { %111 = dma.done.wait [#allocation3], 256  }
  0x13   :  { %112 = vsyncadd [#allocation3], 4294967040  ;;  %s118_s20 = smov [#allocation5]   ;;  %v23_v0 = vld [vmem:[#allocation2] sm:$0xff]  ;;  %v24_v1 = vld [vmem:[#allocation2 + $0x8] sm:$0xff] }
  0x14   :  { %s40_s21 = sshll.u32 %s118_s20, 4  ;;  %v59_v2 = vpack.c.bf16 %v24_v1, %v23_v0  ;;  %s41_s21 = int_to_ptr.vmem [resolvable:$true] %s40_s21 }
  0x15   :  { %s89_s22 = scalar_lea.vmem %s41_s21, 128  ;;  %p94_p9 = scmp.lt.s32.totalorder %s41_s21, %s41_s21 }
  0x16   :  { %60 = vst [vmem:[#allocation5] sm:$0xff] %v59_v2   ;;  %p90_p8 = scmp.ne.s32.totalorder %s41_s21, %s89_s22  ;;  %p95_p10 = scmp.lt.s32.totalorder %s89_s22, %s89_s22 }
  0x18   :  { %p96_p11 = por %p95_p10, %p94_p9 }
  0x1a   :  { %p97_p12 = pnand %p96_p11, %p90_p8 }
  0x1c   :  { %100 = shalt.err (!%p97_p12)
}
  0x1d   :  { %s101_s0 = scalar_lea.hbm %s156_s1, 128 }
  0x1e   :  { %p102_p13 = scmp.ne.s32.totalorder %s156_s1, %s101_s0  ;;  %p105_p0 = scmp.lt.u32.totalorder %s101_s0, %s156_s1 }
  0x20   :  { %p107_p1 = pnand %p105_p0, %p102_p13 }
  0x22   :  { %110 = shalt.err (!%p107_p1)
}
  0x23   :  { %s119_s29 = smov 64   ;;  %s120_s30 = smov 4  }
  0x24   :  { %46 = dma.vmem_to_hbm [thread:$0]  %s41_s21, 128, %s156_s1, [#allocation4], %s119_s29, %s119_s29, %s120_s30  }
  0x25   :  { %113 = dma.done.wait [#allocation4], 128  }
  0x26   :  { %114 = vsyncadd [#allocation4], 4294967168 }
  0x27   :  { %50 = vsyncpa [#allocation3], 1 }
  0x28   :  { %51 = vsyncpa [#allocation4], 1 }

</bundles_post_ra>
